<compile_context>
chip_gen: v5e
topology: v5e:2x2
jax: 0.10.0
libtpu: 0.0.40
codegen_flags: <defaults>
</compile_context>

<pallas_src>
import math

import jax
import jax.numpy as jnp
from jax.experimental import pallas as pl
from jax.experimental.pallas import tpu as pltpu


# ----------------------------------------------------------------------------
# Parameter construction (plain JAX glue) — mirrors the PyTorch __init__.
# ----------------------------------------------------------------------------
def gram_schmidt(vectors):
    """vectors: (n, d) float32.  Classical Gram-Schmidt, matches torch impl."""
    out = []
    for i in range(vectors.shape[0]):
        x = vectors[i]
        for y in out:
            x = x - (jnp.vdot(y, x) / jnp.vdot(y, y)) * y
        x = x / jnp.linalg.norm(x)
        out.append(x)
    return jnp.stack(out)


def initialize_orthogonal_filters(key, c, h, w):
    """Deterministic equivalent of the torch.rand-based initializer."""
    if h * w < c:
        n = c // (h * w)
        keys = jax.random.split(key, n)
        blocks = []
        for i in range(n):
            v = jax.random.uniform(keys[i], (h * w, h * w), dtype=jnp.float32)
            blocks.append(gram_schmidt(v))
        flat = jnp.concatenate(blocks, axis=0)
    else:
        v = jax.random.uniform(key, (c, h * w), dtype=jnp.float32)
        flat = gram_schmidt(v)
    return flat.reshape(-1, h, w)[:c]


def adaptive_avg_pool2d(x, out_h, out_w):
    """Plain-JAX glue matching torch.nn.functional.adaptive_avg_pool2d."""
    N, C, H, W = x.shape
    if H % out_h == 0 and W % out_w == 0:
        # Evenly divisible: one reshape + mean (no O(H*W) slice-op blowup).
        return x.reshape(N, C, out_h, H // out_h, out_w, W // out_w).mean(axis=(3, 5))
    # TODO(synk): fuse the (rare) uneven pooling into the Pallas kernel to avoid
    # the extra HBM round-trip and the per-bucket op fanout.
    rows = []
    for i in range(out_h):
        hs, he = (i * H) // out_h, -(-((i + 1) * H) // out_h)
        cols = []
        for j in range(out_w):
            ws, we = (j * W) // out_w, -(-((j + 1) * W) // out_w)
            cols.append(jnp.mean(x[:, :, hs:he, ws:we], axis=(-1, -2)))
        rows.append(jnp.stack(cols, axis=-1))
    return jnp.stack(rows, axis=-2)


# ----------------------------------------------------------------------------
# Pallas kernel: block of (batch, channel) rows, multiply by the small
# VMEM-resident filter tile (broadcast over row-groups) and reduce over the
# spatial (lane) axis.
# ----------------------------------------------------------------------------
def _gst_kernel(f_ref, x_ref, o_ref):
    # f_ref: (f_rows, HW) f32  orthogonal filters, f_rows = lcm(C, pack);
    #                          constant block index -> fetched once, resident.
    # x_ref: (nbc, HW)         nbc (batch, channel) rows, native dtype,
    #                          nbc % f_rows == 0 and every block starts at ch 0.
    # o_ref: (nbc, 1)   f32    per-row spatial sums.
    f_rows, hw = f_ref.shape
    nbc = x_ref.shape[0]
    x = x_ref[...].astype(jnp.float32)          # cast in-kernel: bf16 DMA stays bf16
    if nbc == f_rows:
        o_ref[...] = jnp.sum(x * f_ref[...], axis=-1, keepdims=True)
    else:
        g = nbc // f_rows
        # f_rows is a multiple of the sublane tile -> this reshape is a pure
        # view (no relayout); the filter broadcasts over the group dim.
        prod = x.reshape(g, f_rows, hw) * f_ref[...][None, :, :]
        o_ref[...] = jnp.sum(prod, axis=-1, keepdims=True).reshape(nbc, 1)


_BLOCK_BYTES_TARGET = 2 * 1024 * 1024   # per-block f32 working-set target
_MIN_SPLIT_BYTES = 512 * 1024           # v7x: force >=2 grid steps above this


def _round_down(a, m):
    return (a // m) * m


def gram_schmidt_transform(x, constant_filter):
    """Forward: (constant_filter * x).sum(dim=(-1,-2), keepdim=True)."""
    N, C, h, w = x.shape
    Cf, H, W = constant_filter.shape
    assert Cf == C
    if h != H or w != W:
        x = adaptive_avg_pool2d(x, H, W)
    HW = H * W
    out_dtype = jnp.promote_types(x.dtype, constant_filter.dtype)

    total_rows = N * C
    itemsize = jnp.dtype(x.dtype).itemsize
    pack = max(8, 32 // itemsize)                    # 8 / 16 / 32 rows for 32/16/8-bit
    base = (C * pack) // math.gcd(C, pack)           # lcm(C, pack)

    if total_rows < base:
        # Tiny input: one full block (block dims equal array dims, always legal).
        nbc = total_rows
        f_rows = total_rows                          # still a multiple of C
    else:
        f_rows = base
        # Size the block from the *f32* working set: this also bounds the
        # in-kernel f32 product temp, and keeps bf16 inputs from doubling nbc.
        rows_target = max(base, _round_down(_BLOCK_BYTES_TARGET // (HW * 4), base))
        nbc = min(rows_target, _round_down(total_rows, base))
        # v7x megacore: guarantee >=2 grid steps when there is real work so the
        # "parallel" axis can shard across both TensorCores.
        if total_rows * HW * 4 > _MIN_SPLIT_BYTES and total_rows >= 2 * base:
            nbc = min(nbc, _round_down(total_rows // 2, base))
        nbc = max(nbc, base)
        # Prefer an nbc that divides total_rows (searched within 2x of the
        # target) so the last block is full; otherwise rely on a partial last
        # block — Pallas only writes back in-bounds rows, and there is NO
        # wrapper-side jnp.pad (which would re-copy all of x through HBM).
        cand = nbc
        while cand >= base and 2 * cand >= nbc:
            if total_rows % cand == 0:
                nbc = cand
                break
            cand -= base
    # TODO(synk): for extreme C*HW (single base block >> VMEM) add an HW-axis
    # reduction grid with an accumulator instead of one huge row block.

    num_blocks = pl.cdiv(total_rows, nbc)

    # Wrapper-side layout plumbing — cheap: free reshape of x (no pad, no
    # upcast) and a KiB-scale filter tile (f_rows rows, not nbc rows).
    xf = x.reshape(total_rows, HW)
    f_small = jnp.tile(constant_filter.reshape(C, HW).astype(jnp.float32),
                       (f_rows // C, 1))             # (f_rows, HW)

    cost = pl.CostEstimate(
        flops=2 * total_rows * HW,
        transcendentals=0,
        bytes_accessed=total_rows * HW * itemsize + f_rows * HW * 4 + total_rows * 4,
    )

    out = pl.pallas_call(
        _gst_kernel,
        out_shape=jax.ShapeDtypeStruct((total_rows, 1), jnp.float32),
        grid_spec=pltpu.PrefetchScalarGridSpec(
            num_scalar_prefetch=0,
            grid=(num_blocks,),
            in_specs=[
                pl.BlockSpec((f_rows, HW), lambda b: (0, 0)),   # filter: resident
                pl.BlockSpec((nbc, HW), lambda b: (b, 0)),      # x rows for step b
            ],
            out_specs=pl.BlockSpec((nbc, 1), lambda b: (b, 0)),
        ),
        compiler_params=pltpu.CompilerParams(
            dimension_semantics=("parallel",),        # shard blocks across v7x's 2 TCs
            vmem_limit_bytes=32 * 1024 * 1024,        # explicit headroom (safe on v5e..v7x)
        ),
        cost_estimate=cost,
    )(f_small, xf)

    return out.reshape(N, C, 1, 1).astype(out_dtype)


# ----------------------------------------------------------------------------
if __name__ == "__main__":
    key = jax.random.PRNGKey(0)
    k_filter, k_x1, k_x2 = jax.random.split(key, 3)

    C, Hf = 4, 16                       # GramSchmidtTransform(c=4, h=16)
    constant_filter = initialize_orthogonal_filters(k_filter, C, Hf, Hf)

    # Case 1: spatial matches the filter (no pooling).
    x1 = jax.random.normal(k_x1, (2, C, 16, 16), dtype=jnp.float32)  # NCHW
    y1 = jax.block_until_ready(gram_schmidt_transform(x1, constant_filter))
    ref1 = jnp.sum(constant_filter[None] * x1, axis=(-1, -2), keepdims=True)
    assert y1.shape == (2, C, 1, 1)
    assert jnp.allclose(y1, ref1, atol=1e-5, rtol=1e-5)

    # Case 2: larger spatial -> adaptive average pooling path.
    x2 = jax.random.normal(k_x2, (2, C, 32, 32), dtype=jnp.float32)
    y2 = jax.block_until_ready(gram_schmidt_transform(x2, constant_filter))
    x2p = adaptive_avg_pool2d(x2, Hf, Hf)
    ref2 = jnp.sum(constant_filter[None] * x2p, axis=(-1, -2), keepdims=True)
    assert y2.shape == (2, C, 1, 1)
    assert jnp.allclose(y2, ref2, atol=1e-5, rtol=1e-5)

    print("KERNEL_OK")
</pallas_src>

<mosaic_0001>
module attributes {stable_mosaic.version = 11 : i64} {
  func.func @_gst_kernel(%arg0: i32, %arg1: memref<8x256xf32, #tpu.memory_space<vmem>>, %arg2: memref<8x256xf32, #tpu.memory_space<vmem>>, %arg3: memref<8x1xf32, #tpu.memory_space<vmem>>) attributes {dimension_semantics = [#tpu.dimension_semantics<parallel>], iteration_bounds = array<i64: 1>, scalar_prefetch = 0 : i64, scratch_operands = 0 : i64, tpu.core_type = #tpu.core_type<tc>, window_params = [{pipeline_mode = #tpu.pipeline_mode<synchronous>, transform_indices = @transform_0, window_bounds = array<i64: 8, 256>}, {transform_indices = @transform_1, window_bounds = array<i64: 8, 256>}, {transform_indices = @transform_2, window_bounds = array<i64: 8, 1>}]} {
    %c0 = arith.constant 0 : index
    %c0_0 = arith.constant 0 : index
    %0 = vector.load %arg2[%c0, %c0_0] : memref<8x256xf32, #tpu.memory_space<vmem>>, vector<8x256xf32>
    %c0_1 = arith.constant 0 : index
    %c0_2 = arith.constant 0 : index
    %1 = vector.load %arg1[%c0_1, %c0_2] : memref<8x256xf32, #tpu.memory_space<vmem>>, vector<8x256xf32>
    %2 = arith.mulf %0, %1 : vector<8x256xf32>
    %cst = arith.constant dense<0.000000e+00> : vector<8xf32>
    %3 = vector.multi_reduction <add>, %2, %cst [1] : vector<8x256xf32> to vector<8xf32>
    %4 = vector.shape_cast %3 : vector<8xf32> to vector<8x1xf32>
    %c0_3 = arith.constant 0 : index
    %c0_4 = arith.constant 0 : index
    %5 = vector.load %arg3[%c0_3, %c0_4] : memref<8x1xf32, #tpu.memory_space<vmem>>, vector<8x1xf32>
    tpu.vector_store %arg3[%c0_3, %c0_4], %4 {strides = array<i32>} : memref<8x1xf32, #tpu.memory_space<vmem>>, vector<8x1xf32>,
    return
  }
  func.func @transform_0(%arg0: i32) -> (i32, i32) {
    %c0_i32 = arith.constant 0 : i32
    %c0_i32_0 = arith.constant 0 : i32
    %c0_i32_1 = arith.constant 0 : i32
    return %c0_i32, %c0_i32_0 : i32, i32
  }
  func.func @transform_1(%arg0: i32) -> (i32, i32) {
    %c0_i32 = arith.constant 0 : i32
    %c0_i32_0 = arith.constant 0 : i32
    return %arg0, %c0_i32 : i32, i32
  }
  func.func @transform_2(%arg0: i32) -> (i32, i32) {
    %c0_i32 = arith.constant 0 : i32
    %c0_i32_0 = arith.constant 0 : i32
    return %arg0, %c0_i32 : i32, i32
  }
}

</mosaic_0001>

<bundles_post_ra>
// kernel: tpu_custom_call.1
= control target key start
LH: loop header
LB: loop body
LE: loop exit
PB: predicated region body
PF: predicated region fallthrough
CT: control target
= control target key end

     0   :  { %7 = vsyncpa [#allocation3], 0  ;;  %s136_s0 = inlined_call_operand.hbm [shape: f32[8,256], index: 0, kind: input, shape index: {}]   ;;  %s137_s1 = inlined_call_operand.hbm [shape: f32[8,256], index: 1, kind: input, shape index: {}]   ;;  %s138_s2 = inlined_call_operand.vmem [shape: f32[8,1], index: 2, kind: output, shape index: {}]  }
   0x1   :  { %s14_s11 = sshll.u32 %s136_s0, 4  ;;  %s15_s11 = int_to_ptr.hbm [resolvable:$true] %s14_s11 }
   0x2   :  { %8 = vsyncpa [#allocation5], 0  ;;  %s110_s12 = smov [#allocation2]   ;;  %s25_s16 = sshll.u32 %s137_s1, 4  ;;  %s26_s16 = int_to_ptr.hbm [resolvable:$true] %s25_s16 }
   0x3   :  { %s16_s13 = sshll.u32 %s110_s12, 4  ;;  %s111_s17 = smov [#allocation4]   ;;  %s17_s13 = int_to_ptr.vmem [resolvable:$true] %s16_s13 }
   0x4   :  { %19 = dma.hbm_to_vmem [thread:$0]  %s15_s11, 256, %s17_s13, [#allocation3]  }
   0x5   :  { %s27_s18 = sshll.u32 %s111_s17, 4  ;;  %s28_s18 = int_to_ptr.vmem [resolvable:$true] %s27_s18 }
   0x6   :  { %30 = dma.hbm_to_vmem [thread:$0]  %s26_s16, 256, %s28_s18, [#allocation5]  }
   0x7   :  { %106 = dma.done.wait [#allocation3], 256  }
   0x8   :  { %107 = vsyncadd [#allocation3], 4294967040 }
   0x9   :  { %108 = dma.done.wait [#allocation5], 256  }
   0xa   :  { %109 = vsyncadd [#allocation5], 4294967040  ;;  %v39_v0 = vld [vmem:[#allocation4] sm:$0xff]  ;;  %v40_v1 = vld [vmem:[#allocation4 + $0x8] sm:$0xff]  ;;  %vm48_vm0 = vcmask 7168  }
   0xb   :  { %v41_v2 = vld [vmem:[#allocation2] sm:$0xff]  ;;  %v42_v3 = vld [vmem:[#allocation2 + $0x8] sm:$0xff] }
   0xc   :  { %v43_v4 = vmul.f32 %v41_v2, %v39_v0  ;;  %v44_v5 = vmul.f32 %v42_v3, %v40_v1 }
   0xe   :  { %v45_v6 = vadd.f32 %v44_v5, %v43_v4 }
  0x10   :  { %46 = vadd.xlane.f32.xlu0 %v45_v6 }
  0x83   :  { %v47_v7 = vpop.xlane.xlu0 %46 }
  0x84   :  { %49 = vst.msk [vmem:[%s138_s2] sm:$0xff] %vm48_vm0, %v47_v7 }
  0x85   :  { %54 = vsyncpa [#allocation3], 1 }
  0x86   :  { %55 = vsyncpa [#allocation5], 1 }

</bundles_post_ra>
